<compile_context>
chip_gen: v5e
topology: v5e:2x2
jax: 0.10.0
libtpu: 0.0.40
codegen_flags: <defaults>
</compile_context>

<pallas_src>
import math
import numpy as np
import jax
import jax.numpy as jnp
from jax import lax
from jax.experimental import pallas as pl
from jax.experimental.pallas import tpu as pltpu

# Full-f32 matmuls everywhere (reference einsums and in-kernel dots) so the
# numerical comparison is meaningful.
jax.config.update("jax_default_matmul_precision", "highest")


# ---------------------------------------------------------------------------
# Kernel 1: fused row-tiled matmul + bias (used for every dense op)
# ---------------------------------------------------------------------------
def _matmul_bias_kernel(x_ref, w_ref, b_ref, o_ref):
    acc = jnp.dot(x_ref[...], w_ref[...], preferred_element_type=jnp.float32)
    o_ref[...] = (acc + b_ref[...]).astype(o_ref.dtype)


def pallas_matmul(x, w, b=None, *, block_rows=256):
    """y = x @ w + b, x: (..., K), w: (K, N), b: (N,) or None."""
    *lead, K = x.shape
    Nout = w.shape[1]
    rows = int(np.prod(lead)) if lead else 1
    x2 = x.reshape(rows, K)
    if b is None:
        b = jnp.zeros((Nout,), dtype=x.dtype)
    b2 = b.reshape(1, Nout).astype(jnp.float32)
    tr = rows if rows <= block_rows else block_rows
    out = pl.pallas_call(
        _matmul_bias_kernel,
        out_shape=jax.ShapeDtypeStruct((rows, Nout), x.dtype),
        grid_spec=pltpu.PrefetchScalarGridSpec(
            num_scalar_prefetch=0,
            grid=(pl.cdiv(rows, tr),),
            in_specs=[
                pl.BlockSpec((tr, K), lambda i: (i, 0)),
                pl.BlockSpec((K, Nout), lambda i: (0, 0)),
                pl.BlockSpec((1, Nout), lambda i: (0, 0)),
            ],
            out_specs=pl.BlockSpec((tr, Nout), lambda i: (i, 0)),
        ),
        compiler_params=pltpu.CompilerParams(dimension_semantics=("parallel",)),
    )(x2, w, b2)
    return out.reshape(*lead, Nout)


# ---------------------------------------------------------------------------
# Kernel 2: FourierCrossAttentionW (mode-truncated DFT cross attention)
# ---------------------------------------------------------------------------
def _fourier_cross_attn_kernel(q_ref, k_ref, fcos_ref, fsin_ref,
                               icos_ref, isin_ref, o_ref):
    xq = q_ref[0]            # (E, L)
    xk = k_ref[0]            # (E, L)
    fcos = fcos_ref[...]     # (L, M)
    fsin = fsin_ref[...]     # (L, M)

    # Truncated rfft: X[m] = sum_t x[t] * exp(-2i*pi*m*t/L)
    qr = jnp.dot(xq, fcos, preferred_element_type=jnp.float32)   # (E, M)
    qi = jnp.dot(xq, fsin, preferred_element_type=jnp.float32)
    kr = jnp.dot(xk, fcos, preferred_element_type=jnp.float32)
    ki = jnp.dot(xk, fsin, preferred_element_type=jnp.float32)

    # A[x, y] = sum_e Qf[e, x] * Kf[e, y]     (complex, no conjugation)
    dn_e = (((0,), (0,)), ((), ()))           # contract the E axis
    ar = (lax.dot_general(qr, kr, dn_e, preferred_element_type=jnp.float32)
          - lax.dot_general(qi, ki, dn_e, preferred_element_type=jnp.float32))
    ai = (lax.dot_general(qr, ki, dn_e, preferred_element_type=jnp.float32)
          + lax.dot_general(qi, kr, dn_e, preferred_element_type=jnp.float32))

    # complex tanh: tanh(a+ib) = (sinh 2a + i sin 2b) / (cosh 2a + cos 2b),
    # written so large |a| cannot produce inf/inf.
    x2 = 2.0 * ar
    y2 = 2.0 * ai
    sech = 1.0 / (0.5 * (jnp.exp(x2) + jnp.exp(-x2)))    # -> 0 for large |x2|
    den = 1.0 + jnp.cos(y2) * sech
    t_re = jnp.tanh(x2) / den
    t_im = jnp.sin(y2) * sech / den

    # Out[e, x] = sum_y T[x, y] * Kf[e, y]    (complex)
    dn_y = (((1,), (1,)), ((), ()))           # contract the mode axis y
    o_re = (lax.dot_general(kr, t_re, dn_y, preferred_element_type=jnp.float32)
            - lax.dot_general(ki, t_im, dn_y, preferred_element_type=jnp.float32))
    o_im = (lax.dot_general(kr, t_im, dn_y, preferred_element_type=jnp.float32)
            + lax.dot_general(ki, t_re, dn_y, preferred_element_type=jnp.float32))

    # Mode-truncated irfft; the 1/(ic*oc*L) scale and the factor-2 weights for
    # modes >= 1 are folded into icos/isin by the wrapper.
    out = (jnp.dot(o_re, icos_ref[...], preferred_element_type=jnp.float32)
           + jnp.dot(o_im, isin_ref[...], preferred_element_type=jnp.float32))
    o_ref[0] = out.astype(o_ref.dtype)


def fourier_cross_attention_pallas(q, k, *, modes, in_ch, out_ch):
    """q, k: (B, L, E, H) f32 -> (B, L, E, H).
    (FourierCrossAttentionW never uses `v` numerically -- only its length, which
    equals L at every call site inside MultiWaveletCross.)"""
    assert q.shape == k.shape
    B, L, E, H = q.shape
    M = min(L // 2, modes)
    if M == 0:                       # zero retained modes -> irfft of zeros
        return jnp.zeros_like(q)

    xq = jnp.transpose(q, (0, 3, 2, 1)).reshape(B * H, E, L)
    xk = jnp.transpose(k, (0, 3, 2, 1)).reshape(B * H, E, L)

    t = np.arange(L, dtype=np.float64)[:, None]
    m = np.arange(M, dtype=np.float64)[None, :]
    ang = 2.0 * np.pi * t * m / L                               # (L, M)
    fcos = jnp.asarray(np.cos(ang), dtype=jnp.float32)
    fsin = jnp.asarray(-np.sin(ang), dtype=jnp.float32)
    wts = np.full((M, 1), 2.0)
    wts[0, 0] = 1.0
    scale = 1.0 / (in_ch * out_ch * L)
    icos = jnp.asarray(wts * np.cos(ang.T) * scale, dtype=jnp.float32)   # (M, L)
    isin = jnp.asarray(-wts * np.sin(ang.T) * scale, dtype=jnp.float32)  # (M, L)

    out = pl.pallas_call(
        _fourier_cross_attn_kernel,
        out_shape=jax.ShapeDtypeStruct((B * H, E, L), jnp.float32),
        grid_spec=pltpu.PrefetchScalarGridSpec(
            num_scalar_prefetch=0,
            grid=(B * H,),
            in_specs=[
                pl.BlockSpec((1, E, L), lambda i: (i, 0, 0)),
                pl.BlockSpec((1, E, L), lambda i: (i, 0, 0)),
                pl.BlockSpec((L, M), lambda i: (0, 0)),
                pl.BlockSpec((L, M), lambda i: (0, 0)),
                pl.BlockSpec((M, L), lambda i: (0, 0)),
                pl.BlockSpec((M, L), lambda i: (0, 0)),
            ],
            out_specs=pl.BlockSpec((1, E, L), lambda i: (i, 0, 0)),
        ),
        compiler_params=pltpu.CompilerParams(dimension_semantics=("parallel",)),
    )(xq, xk, fcos, fsin, icos, isin)

    return out.reshape(B, H, E, L).transpose(0, 3, 2, 1)


# ---------------------------------------------------------------------------
# MultiWaveletCross forward (Pallas path)
# ---------------------------------------------------------------------------
def multiwavelet_cross_pallas(q, k, v, params, cfg):
    B, N, H, E = q.shape
    _, S, _, _ = k.shape
    c, kk, L0, modes = cfg["c"], cfg["k"], cfg["L"], cfg["modes"]
    ic, oc = cfg["in_channels"], cfg["out_channels"]
    CK = c * kk

    q = pallas_matmul(q.reshape(B, N, H * E), params["Wq"], params["bq"])   # (B, N, CK)
    kp = pallas_matmul(k.reshape(B, S, H * E), params["Wk"], params["bk"])  # (B, S, CK)
    vp = pallas_matmul(v.reshape(B, S, H * E), params["Wv"], params["bv"])  # (B, S, CK)

    if N > S:
        pad = jnp.zeros((B, N - S, CK), q.dtype)
        kp = jnp.concatenate([kp, pad], axis=1)
        vp = jnp.concatenate([vp, pad], axis=1)
    else:
        kp = kp[:, :N]
        vp = vp[:, :N]

    ns = math.floor(math.log2(N))
    nl = 2 ** math.ceil(math.log2(N))
    extra = nl - N
    if extra > 0:
        q = jnp.concatenate([q, q[:, :extra]], axis=1)
        kp = jnp.concatenate([kp, kp[:, :extra]], axis=1)
        vp = jnp.concatenate([vp, vp[:, :extra]], axis=1)

    W_ds, W_eo = params["W_ds"], params["W_eo"]

    def wavelet_transform(x):                        # x: (B, Np, CK)
        Bx, Np, _ = x.shape
        xa = x.reshape(Bx, Np // 2, 2 * CK)          # [even-row | odd-row] pairs
        ds = pallas_matmul(xa, W_ds)                 # d and s fused into one matmul
        return ds[..., :CK], ds[..., CK:]

    def attn(xq, xk):                                # (B, Lx, CK) -> (B, Lx, CK)
        Lx = xq.shape[1]
        o = fourier_cross_attention_pallas(
            xq.reshape(B, Lx, c, kk), xk.reshape(B, Lx, c, kk),
            modes=modes, in_ch=ic, out_ch=oc)
        return o.reshape(B, Lx, CK)

    # Wavelet decomposition of q and k.  The decomposed v is consumed by
    # FourierCrossAttentionW only through its sequence length (== k's), so its
    # decomposition contributes nothing to the output and is elided here.
    Ud_q, Ud_k = [], []
    for _ in range(ns - L0):
        d, q = wavelet_transform(q)
        Ud_q.append((d, q))
    for _ in range(ns - L0):
        d, kp = wavelet_transform(kp)
        Ud_k.append((d, kp))

    Ud, Us = [], []
    for i in range(ns - L0):
        dq, dk = Ud_q[i], Ud_k[i]
        # attn1 and attn3 are parameter-free, identically configured, and fed
        # identical tensors (sq/sk/sv == dq[0]/dk[0]/dv[0]) -> compute once.
        a_d = attn(dq[0], dk[0])      # == attn1(...) == attn3(...)
        a_s = attn(dq[1], dk[1])      # attn2 on the running coarse part
        Ud.append(a_d + a_s)
        Us.append(a_d)

    vv = attn(q, kp)                  # attn4 on the coarsest level

    for i in range(ns - L0 - 1, -1, -1):
        vv = vv + Us[i]
        x_cat = jnp.concatenate([vv, Ud[i]], axis=-1)    # (B, Nh, 2*CK)
        eo = pallas_matmul(x_cat, W_eo)                  # even and odd fused
        Bx, Nh, _ = eo.shape
        vv = eo.reshape(Bx, Nh, 2, CK).reshape(Bx, 2 * Nh, CK)   # interleave e/o

    return pallas_matmul(vv[:, :N], params["Wout"], params["bout"])  # (B, N, ich)


# ---------------------------------------------------------------------------
# Pure-JAX reference (faithful port of the PyTorch forward)
# ---------------------------------------------------------------------------
def _fourier_cross_attention_ref(q, k, v, *, modes, in_ch, out_ch):
    B, L, E, H = q.shape
    xq = jnp.transpose(q, (0, 3, 2, 1))
    xk = jnp.transpose(k, (0, 3, 2, 1))
    xv = jnp.transpose(v, (0, 3, 2, 1))
    Mq = min(L // 2, modes)
    Mkv = min(xv.shape[3] // 2, modes)
    xq_ft = jnp.fft.rfft(xq, axis=-1)[..., :Mq]
    xk_ft = jnp.fft.rfft(xk, axis=-1)[..., :Mkv]
    xqk_ft = jnp.einsum("bhex,bhey->bhxy", xq_ft, xk_ft)
    xqk_ft = jnp.tanh(xqk_ft)                                   # complex tanh
    xqkv_ft = jnp.einsum("bhxy,bhey->bhex", xqk_ft, xk_ft)
    out_ft = jnp.zeros((B, H, E, L // 2 + 1), dtype=jnp.complex64)
    out_ft = out_ft.at[..., :Mq].set(xqkv_ft)
    out = jnp.fft.irfft(out_ft / in_ch / out_ch, n=L, axis=-1)
    return jnp.transpose(out, (0, 3, 2, 1))


def multiwavelet_cross_ref(q, k, v, params, cfg, filters):
    B, N, H, E = q.shape
    _, S, _, _ = k.shape
    c, kk, L0, modes = cfg["c"], cfg["k"], cfg["L"], cfg["modes"]
    ic, oc = cfg["in_channels"], cfg["out_channels"]
    ec_d = jnp.asarray(filters["ec_d"])
    ec_s = jnp.asarray(filters["ec_s"])
    rc_e = jnp.asarray(filters["rc_e"])
    rc_o = jnp.asarray(filters["rc_o"])

    q = (q.reshape(B, N, -1) @ params["Wq"] + params["bq"]).reshape(B, N, c, kk)
    k = (k.reshape(B, S, -1) @ params["Wk"] + params["bk"]).reshape(B, S, c, kk)
    v = (v.reshape(B, S, -1) @ params["Wv"] + params["bv"]).reshape(B, S, c, kk)

    if N > S:
        zeros = jnp.zeros_like(q[:, :N - S])
        v = jnp.concatenate([v, zeros], axis=1)
        k = jnp.concatenate([k, zeros], axis=1)
    else:
        v = v[:, :N]
        k = k[:, :N]

    ns = math.floor(math.log2(N))
    nl = 2 ** math.ceil(math.log2(N))
    extra = nl - N
    if extra > 0:
        q = jnp.concatenate([q, q[:, :extra]], axis=1)
        k = jnp.concatenate([k, k[:, :extra]], axis=1)
        v = jnp.concatenate([v, v[:, :extra]], axis=1)

    def wavelet_transform(x):
        xa = jnp.concatenate([x[:, ::2], x[:, 1::2]], axis=-1)
        return xa @ ec_d, xa @ ec_s

    def even_odd(x):
        Bx, Nh, cc, _ = x.shape
        x_e = x @ rc_e
        x_o = x @ rc_o
        out = jnp.zeros((Bx, Nh * 2, cc, kk), dtype=x.dtype)
        out = out.at[:, ::2].set(x_e)
        out = out.at[:, 1::2].set(x_o)
        return out

    attn = lambda a, b, cv: _fourier_cross_attention_ref(a, b, cv, modes=modes,
                                                         in_ch=ic, out_ch=oc)

    Ud_q, Us_q, Ud_k, Us_k, Ud_v, Us_v = [], [], [], [], [], []
    for _ in range(ns - L0):
        d, q = wavelet_transform(q)
        Ud_q.append((d, q)); Us_q.append(d)
    for _ in range(ns - L0):
        d, k = wavelet_transform(k)
        Ud_k.append((d, k)); Us_k.append(d)
    for _ in range(ns - L0):
        d, v = wavelet_transform(v)
        Ud_v.append((d, v)); Us_v.append(d)

    Ud, Us = [], []
    for i in range(ns - L0):
        dq, sq = Ud_q[i], Us_q[i]
        dk, sk = Ud_k[i], Us_k[i]
        dv, sv = Ud_v[i], Us_v[i]
        Ud.append(attn(dq[0], dk[0], dv[0]) + attn(dq[1], dk[1], dv[1]))
        Us.append(attn(sq, sk, sv))
    v = attn(q, k, v)
    for i in range(ns - L0 - 1, -1, -1):
        v = v + Us[i]
        v = jnp.concatenate([v, Ud[i]], axis=-1)
        v = even_odd(v)
    return v[:, :N].reshape(B, N, -1) @ params["Wout"] + params["bout"]


# ---------------------------------------------------------------------------
# Deterministic parameter / filter construction
# ---------------------------------------------------------------------------
def build_params(key, cfg):
    c, kk, ich = cfg["c"], cfg["k"], cfg["ich"]

    # TODO(synk): get_filter(base, k) (Legendre/Chebyshev multiwavelet filter-bank
    # construction) is host-side __init__ code, not part of the forward pass;
    # deterministic placeholder filter matrices of the correct shapes are used here.
    rng = np.random.RandomState(0)

    def filt():
        return (0.7 / math.sqrt(kk)) * rng.standard_normal((kk, kk)).astype(np.float32)

    H0, H1, G0, G1 = filt(), filt(), filt(), filt()
    PHI0 = np.eye(kk, dtype=np.float32)
    PHI1 = np.eye(kk, dtype=np.float32)
    H0r, G0r = H0 @ PHI0, G0 @ PHI0
    H1r, G1r = H1 @ PHI1, G1 @ PHI1
    for Mt in (H0r, H1r, G0r, G1r):
        Mt[np.abs(Mt) < 1e-8] = 0.0

    ec_s = np.concatenate([H0.T, H1.T], axis=0)      # (2k, k)
    ec_d = np.concatenate([G0.T, G1.T], axis=0)      # (2k, k)
    rc_e = np.concatenate([H0r, G0r], axis=0)        # (2k, k)
    rc_o = np.concatenate([H1r, G1r], axis=0)        # (2k, k)
    filters = dict(ec_s=ec_s, ec_d=ec_d, rc_e=rc_e, rc_o=rc_o)

    # Block-diagonal (kron) forms so a whole wavelet/evenOdd level is ONE
    # lane-dense fused matmul on the flat (c*k) feature layout.
    I_c = np.eye(c, dtype=np.float32)
    W_d = np.concatenate([np.kron(I_c, ec_d[:kk]), np.kron(I_c, ec_d[kk:])], axis=0)
    W_s = np.concatenate([np.kron(I_c, ec_s[:kk]), np.kron(I_c, ec_s[kk:])], axis=0)
    W_ds = np.concatenate([W_d, W_s], axis=1).astype(np.float32)         # (2ck, 2ck)
    W_e = np.concatenate([np.kron(I_c, rc_e[:kk]), np.kron(I_c, rc_e[kk:])], axis=0)
    W_o = np.concatenate([np.kron(I_c, rc_o[:kk]), np.kron(I_c, rc_o[kk:])], axis=0)
    W_eo = np.concatenate([W_e, W_o], axis=1).astype(np.float32)         # (2ck, 2ck)

    def linear(key_, fan_in, fan_out, scale):
        kw, kb = jax.random.split(key_)
        W = (scale / math.sqrt(fan_in)) * jax.random.normal(kw, (fan_in, fan_out), jnp.float32)
        b = 0.01 * jax.random.normal(kb, (fan_out,), jnp.float32)
        return W, b

    CK = c * kk
    k1, k2, k3, k4 = jax.random.split(key, 4)
    Wq, bq = linear(k1, ich, CK, 0.3)
    Wk, bk = linear(k2, ich, CK, 0.3)
    Wv, bv = linear(k3, ich, CK, 0.3)
    Wout, bout = linear(k4, CK, ich, 1.0)

    params = dict(Wq=Wq, bq=bq, Wk=Wk, bk=bk, Wv=Wv, bv=bv,
                  Wout=Wout, bout=bout,
                  W_ds=jnp.asarray(W_ds), W_eo=jnp.asarray(W_eo))
    return params, filters


if __name__ == "__main__":
    # Small but representative configuration: ich = H*E = 32, c*k = 128 (lane-dense).
    cfg = dict(c=16, k=8, L=2, modes=8, in_channels=4, out_channels=4, ich=32)
    B, N, S, H, E = 2, 32, 32, 4, 8
    assert H * E == cfg["ich"]

    key = jax.random.PRNGKey(0)
    kq_, kk_, kv_, kp_ = jax.random.split(key, 4)
    q = jax.random.normal(kq_, (B, N, H, E), dtype=jnp.float32)
    k = jax.random.normal(kk_, (B, S, H, E), dtype=jnp.float32)
    v = jax.random.normal(kv_, (B, S, H, E), dtype=jnp.float32)

    params, filters = build_params(kp_, cfg)

    out = multiwavelet_cross_pallas(q, k, v, params, cfg)
    out = jax.block_until_ready(out)
    assert out.shape == (B, N, cfg["ich"]), out.shape
    assert bool(jnp.all(jnp.isfinite(out))), "non-finite values in kernel output"

    ref = multiwavelet_cross_ref(q, k, v, params, cfg, filters)
    ref = jax.block_until_ready(ref)

    max_err = float(jnp.max(jnp.abs(out - ref)))
    assert jnp.allclose(out, ref, rtol=5e-3, atol=5e-4), f"mismatch vs reference: {max_err}"

    print("KERNEL_OK")
</pallas_src>

<mosaic_0001>
module attributes {stable_mosaic.version = 11 : i64} {
  func.func @_matmul_bias_kernel(%arg0: i32, %arg1: memref<64x32xf32, #tpu.memory_space<vmem>>, %arg2: memref<32x128xf32, #tpu.memory_space<vmem>>, %arg3: memref<1x128xf32, #tpu.memory_space<vmem>>, %arg4: memref<64x128xf32, #tpu.memory_space<vmem>>) attributes {dimension_semantics = [#tpu.dimension_semantics<parallel>], iteration_bounds = array<i64: 1>, scalar_prefetch = 0 : i64, scratch_operands = 0 : i64, tpu.core_type = #tpu.core_type<tc>, window_params = [{transform_indices = @transform_0, window_bounds = array<i64: 64, 32>}, {pipeline_mode = #tpu.pipeline_mode<synchronous>, transform_indices = @transform_1, window_bounds = array<i64: 32, 128>}, {pipeline_mode = #tpu.pipeline_mode<synchronous>, transform_indices = @transform_2, window_bounds = array<i64: 1, 128>}, {transform_indices = @transform_3, window_bounds = array<i64: 64, 128>}]} {
    %c0 = arith.constant 0 : index
    %c0_0 = arith.constant 0 : index
    %0 = vector.load %arg1[%c0, %c0_0] : memref<64x32xf32, #tpu.memory_space<vmem>>, vector<64x32xf32>
    %c0_1 = arith.constant 0 : index
    %c0_2 = arith.constant 0 : index
    %1 = vector.load %arg2[%c0_1, %c0_2] : memref<32x128xf32, #tpu.memory_space<vmem>>, vector<32x128xf32>
    %cst = arith.constant dense<0.000000e+00> : vector<64x128xf32>
    %2 = tpu.matmul %0, %1, %cst {dimension_numbers = #tpu.dot_dimension_numbers<[1], [0], [0], [1], [0, 0, 1, 1], [], []>, precision = #tpu.contract_precision<fp32>} : vector<64x32xf32>, vector<32x128xf32>, vector<64x128xf32> -> vector<64x128xf32>
    %c0_3 = arith.constant 0 : index
    %c0_4 = arith.constant 0 : index
    %3 = vector.load %arg3[%c0_3, %c0_4] : memref<1x128xf32, #tpu.memory_space<vmem>>, vector<1x128xf32>
    %4 = vector.broadcast %3 : vector<1x128xf32> to vector<64x128xf32>
    %5 = arith.addf %2, %4 : vector<64x128xf32>
    %c0_5 = arith.constant 0 : index
    %c0_6 = arith.constant 0 : index
    %6 = vector.load %arg4[%c0_5, %c0_6] : memref<64x128xf32, #tpu.memory_space<vmem>>, vector<64x128xf32>
    tpu.vector_store %arg4[%c0_5, %c0_6], %5 {strides = array<i32>} : memref<64x128xf32, #tpu.memory_space<vmem>>, vector<64x128xf32>,
    return
  }
  func.func @transform_0(%arg0: i32) -> (i32, i32) {
    %c0_i32 = arith.constant 0 : i32
    %c0_i32_0 = arith.constant 0 : i32
    return %arg0, %c0_i32 : i32, i32
  }
  func.func @transform_1(%arg0: i32) -> (i32, i32) {
    %c0_i32 = arith.constant 0 : i32
    %c0_i32_0 = arith.constant 0 : i32
    %c0_i32_1 = arith.constant 0 : i32
    return %c0_i32, %c0_i32_0 : i32, i32
  }
  func.func @transform_2(%arg0: i32) -> (i32, i32) {
    %c0_i32 = arith.constant 0 : i32
    %c0_i32_0 = arith.constant 0 : i32
    %c0_i32_1 = arith.constant 0 : i32
    return %c0_i32, %c0_i32_0 : i32, i32
  }
  func.func @transform_3(%arg0: i32) -> (i32, i32) {
    %c0_i32 = arith.constant 0 : i32
    %c0_i32_0 = arith.constant 0 : i32
    return %arg0, %c0_i32 : i32, i32
  }
}

</mosaic_0001>

<bundles_post_ra>
// kernel: tpu_custom_call.1
= control target key start
LH: loop header
LB: loop body
LE: loop exit
PB: predicated region body
PF: predicated region fallthrough
CT: control target
= control target key end

     0   :  { %vm31_vm0 = vcmask 261120   ;;  %s738_s0 = inlined_call_operand.vmem [shape: f32[64,32], index: 0, kind: input, shape index: {}]   ;;  %s739_s1 = inlined_call_operand.vmem [shape: f32[32,128], index: 1, kind: input, shape index: {}]   ;;  %s740_s2 = inlined_call_operand.vmem [shape: f32[1,128], index: 2, kind: input, shape index: {}]   ;;  %s741_s3 = inlined_call_operand.hbm [shape: f32[64,128], index: 3, kind: output, shape index: {}]  }
   0x1   :  { %v26_v0 = vld [vmem:[%s739_s1 + $0x18] sm:$0xff]  ;;  %v25_v1 = vld [vmem:[%s739_s1 + $0x10] sm:$0xff]  ;;  %v24_v2 = vld [vmem:[%s739_s1 + $0x8] sm:$0xff] }
   0x2   :  { %v554_v3 = vand.u32 4294901760, %v26_v0  ;;  %v556_v4 = vand.u32 4294901760, %v25_v1  ;;  %v558_v5 = vand.u32 4294901760, %v24_v2  ;;  %v23_v6 = vld [vmem:[%s739_s1] sm:$0xff]  ;;  %v20_v8 = vld [vmem:[%s738_s0 + $0x28] sm:$0xff]  ;;  %v21_v13 = vld [vmem:[%s738_s0 + $0x30] sm:$0xff] }
   0x3   :  { %v19_v7 = vld [vmem:[%s738_s0 + $0x20] sm:$0xff]  ;;  %v569_v9 = vand.u32 4294901760, %v23_v6  ;;  %v48_v11 = vsel %vm31_vm0, %v20_v8, 0  ;;  %v51_v21 = vsel %vm31_vm0, %v21_v13, 0 }
   0x4   :  { %v45_v10 = vsel %vm31_vm0, %v19_v7, 0  ;;  %v15_v12 = vld [vmem:[%s738_s0] sm:$0xff]  ;;  %484 = vmatpush.msra.mxu2 %v554_v3  ;;  %v154_v14 = vsub.f32 %v26_v0, %v554_v3  ;;  %v160_v16 = vsub.f32 %v25_v1, %v556_v4  ;;  %v166_v17 = vsub.f32 %v24_v2, %v558_v5  ;;  %69 = vmatpush.msra.mxu0 %v554_v3 }
   0x5   :  { %v581_v15 = vand.u32 4294901760, %v45_v10  ;;  %v587_v18 = vsub.f32 %v23_v6, %v569_v9  ;;  %v589_v19 = vand.u32 4294901760, %v48_v11  ;;  %v33_v20 = vsel %vm31_vm0, %v15_v12, 0 }
   0x6   :  { %8 = vsyncpa [#allocation3], 0  ;;  %485 = vmatpush.msra.mxu2 %v556_v4  ;;  %v155_v22 = vand.u32 4294901760, %v154_v14  ;;  %v161_v24 = vand.u32 4294901760, %v160_v16  ;;  %v167_v25 = vand.u32 4294901760, %v166_v17  ;;  %71 = vmatpush.msra.mxu0 %v556_v4  ;;  %v602_v28 = vand.u32 4294901760, %v33_v20 }
   0x7   :  { %v595_v23 = vsub.f32 %v45_v10, %v581_v15  ;;  %v173_v26 = vand.u32 4294901760, %v587_v18  ;;  %v600_v27 = vsub.f32 %v48_v11, %v589_v19  ;;  %v613_v35 = vand.u32 4294901760, %v51_v21  ;;  %v16_v36 = vld [vmem:[%s738_s0 + $0x8] sm:$0xff]  ;;  %v17_v37 = vld [vmem:[%s738_s0 + $0x10] sm:$0xff]  ;;  %v22_v46 = vld [vmem:[%s738_s0 + $0x38] sm:$0xff]  ;;  %s472_s12 = sshll.u32 %s741_s3, 4  ;;  %s473_s12 = int_to_ptr.hbm [resolvable:$true] %s472_s12 }
   0x8   :  { %486 = vmatpush.msra.mxu2 %v558_v5  ;;  %v156_v29 = vsub.f32 %v154_v14, %v155_v22  ;;  %v162_v31 = vsub.f32 %v160_v16, %v161_v24  ;;  %v168_v32 = vsub.f32 %v166_v17, %v167_v25  ;;  %73 = vmatpush.msra.mxu0 %v558_v5  ;;  %v36_v45 = vsel %vm31_vm0, %v16_v36, 0  ;;  %v18_v57 = vld [vmem:[%s738_s0 + $0x18] sm:$0xff]  ;;  %s523_s13 = smov 128   ;;  %s524_s14 = smov 8  }
   0x9   :  { %v110_v30 = vand.u32 4294901760, %v595_v23  ;;  %v174_v33 = vsub.f32 %v587_v18, %v173_v26  ;;  %v611_v34 = vsub.f32 %v33_v20, %v602_v28  ;;  %v118_v41 = vand.u32 4294901760, %v600_v27 }
   0xa   :  { %487 = vmatpush.msra.mxu2 %v569_v9  ;;  %v157_v38 = vand.u32 4294901760, %v156_v29  ;;  %v163_v40 = vand.u32 4294901760, %v162_v31  ;;  %75 = vmatpush.msra.mxu0 %v569_v9  ;;  %v169_v44 = vand.u32 4294901760, %v168_v32  ;;  %v39_v47 = vsel %vm31_vm0, %v17_v37, 0  ;;  %v717_v31 = vld [vmem:[%s740_s2] ss:$0 sm:$0xff] }
   0xb   :  { %v111_v39 = vsub.f32 %v595_v23, %v110_v30  ;;  %v78_v42 = vand.u32 4294901760, %v611_v34  ;;  %v636_v49 = vand.u32 4294901760, %v36_v45  ;;  %v175_v50 = vand.u32 4294901760, %v174_v33  ;;  %s522_s2 = smov [#allocation2]  }
   0xc   :  { %224 = vmatpush.msrb.mxu2 %v154_v14  ;;  %359 = vmatpush.msrb.mxu0 %v155_v22  ;;  %v119_v51 = vsub.f32 %v600_v27, %v118_v41  ;;  %v642_v52 = vsub.f32 %v51_v21, %v613_v35  ;;  %v644_v53 = vand.u32 4294901760, %v39_v47  ;;  %v54_v56 = vsel %vm31_vm0, %v22_v46, 0  ;;  %s470_s9 = sshll.u32 %s522_s2, 4  ;;  %s471_s9 = int_to_ptr.vmem [resolvable:$true] %s470_s9 }
   0xd   :  { %488 = vmatpush.msra.mxu3 %v157_v38  ;;  %v112_v43 = vand.u32 4294901760, %v111_v39  ;;  %158 = vmatpush.msra.mxu1 %v157_v38  ;;  %v79_v48 = vsub.f32 %v611_v34, %v78_v42  ;;  %v85_v55 = vsub.f32 %v36_v45, %v636_v49  ;;  %v653_v62 = vand.u32 4294901760, %v54_v56 }
   0xe   :  { %227 = vmatpush.msrb.mxu2 %v160_v16  ;;  %363 = vmatpush.msrb.mxu0 %v161_v24  ;;  %v93_v59 = vsub.f32 %v39_v47, %v644_v53  ;;  %v120_v60 = vand.u32 4294901760, %v119_v51  ;;  %v126_v61 = vand.u32 4294901760, %v642_v52  ;;  %v42_v63 = vsel %vm31_vm0, %v18_v57, 0 }
   0xf   :  { %113 = vmatmul.f32.vlgmr.msra.gmra.mxu2 %v112_v43  ;;  %489 = vmatpush.msra.mxu3 %v163_v40  ;;  %v80_v54 = vand.u32 4294901760, %v79_v48  ;;  %v86_v58 = vand.u32 4294901760, %v85_v55  ;;  %v100_v6 = vand.u32 4294901760, %v42_v63  ;;  %v133_v8 = vsub.f32 %v54_v56, %v653_v62 }
  0x10   :  { %164 = vmatpush.msra.mxu1 %v163_v40  ;;  %230 = vmatpush.msrb.mxu2 %v166_v17  ;;  %v94_v2 = vand.u32 4294901760, %v93_v59  ;;  %v127_v7 = vsub.f32 %v642_v52, %v126_v61 }
  0x11   :  { %490 = vmatpush.msra.mxu3 %v169_v44  ;;  %367 = vmatpush.msrb.mxu0 %v167_v25  ;;  %v87_v0 = vsub.f32 %v85_v55, %v86_v58  ;;  %v101_v10 = vsub.f32 %v42_v63, %v100_v6  ;;  %v134_v12 = vand.u32 4294901760, %v133_v8 }
  0x12   :  { %170 = vmatpush.msra.mxu1 %v169_v44  ;;  %81 = vmatmul.f32.vlgmr.msra.gmra.mxu0 %v80_v54  ;;  %v128_v11 = vand.u32 4294901760, %v127_v7 }
  0x13   :  { %491 = vmatpush.msra.mxu3 %v175_v50  ;;  %233 = vmatpush.msrb.mxu2 %v587_v18  ;;  %v88_v1 = vand.u32 4294901760, %v87_v0  ;;  %v102_v14 = vand.u32 4294901760, %v101_v10 }
  0x14   :  { %194 = vmatmul.f32.vlgmr.msra.gmra.mxu3 %v581_v15  ;;  %176 = vmatpush.msra.mxu1 %v175_v50 }
  0x15   :  { %288 = vmatpush.msrb.mxu3 %v554_v3  ;;  %178 = vmatmul.f32.vlgmr.msra.gmra.mxu1 %v602_v28  ;;  %v103_v16 = vsub.f32 %v101_v10, %v102_v14 }
  0x16   :  { %418 = vmatpush.msrb.mxu1 %v554_v3  ;;  %371 = vmatpush.msrb.mxu0 %v173_v26  ;;  %v95_v3 = vsub.f32 %v93_v59, %v94_v2 }
  0x17   :  { %121 = vmatmul.f32.gmra.mxu2 %v120_v60  ;;  %290 = vmatpush.msrb.mxu3 %v556_v4 }
  0x18   :  { %420 = vmatpush.msrb.mxu1 %v556_v4  ;;  %v96_v13 = vand.u32 4294901760, %v95_v3  ;;  %v135_v4 = vsub.f32 %v133_v8, %v134_v12 }
  0x19   :  { %292 = vmatpush.msrb.mxu3 %v558_v5 }
  0x1a   :  { %89 = vmatmul.f32.gmra.mxu0 %v88_v1  ;;  %422 = vmatpush.msrb.mxu1 %v558_v5  ;;  %v136_v17 = vand.u32 4294901760, %v135_v4  ;;  %v104_v5 = vand.u32 4294901760, %v103_v16 }
  0x1b   :  { %294 = vmatpush.msrb.mxu3 %v569_v9 }
  0x1c   :  { %198 = vmatmul.f32.gmra.mxu3 %v589_v19  ;;  %424 = vmatpush.msrb.mxu1 %v569_v9 }
  0x1d   :  { %182 = vmatmul.f32.gmra.mxu1 %v636_v49 }
  0x1f   :  { %129 = vmatmul.f32.gmra.mxu2 %v128_v11 }
  0x22   :  { %97 = vmatmul.f32.gmra.mxu0 %v96_v13 }
  0x24   :  { %202 = vmatmul.f32.gmra.mxu3 %v613_v35 }
  0x25   :  { %186 = vmatmul.f32.gmra.mxu1 %v644_v53 }
  0x27   :  { %137 = vmatmul.f32.gmra.mxu2 %v136_v17 }
  0x2a   :  { %105 = vmatmul.f32.gmra.mxu0 %v104_v5 }
  0x2c   :  { %206 = vmatmul.f32.gmra.mxu3 %v653_v62 }
  0x2d   :  { %190 = vmatmul.f32.gmra.mxu1 %v100_v6 }
  0x2f   :  { %236 = vmatmul.f32.vlgmr.msrb.gmra.mxu2 %v611_v34 }
  0x32   :  { %373 = vmatmul.f32.vlgmr.msrb.gmra.mxu0 %v602_v28 }
  0x34   :  { %298 = vmatmul.f32.vlgmr.msrb.gmra.mxu3 %v78_v42 }
  0x35   :  { %426 = vmatmul.f32.vlgmr.msrb.gmra.mxu1 %v602_v28 }
  0x37   :  { %241 = vmatmul.f32.gmra.mxu2 %v85_v55 }
  0x3a   :  { %377 = vmatmul.f32.gmra.mxu0 %v636_v49 }
  0x3c   :  { %304 = vmatmul.f32.gmra.mxu3 %v86_v58 }
  0x3d   :  { %430 = vmatmul.f32.gmra.mxu1 %v636_v49 }
  0x3f   :  { %246 = vmatmul.f32.gmra.mxu2 %v93_v59 }
  0x42   :  { %381 = vmatmul.f32.gmra.mxu0 %v644_v53 }
  0x44   :  { %310 = vmatmul.f32.gmra.mxu3 %v94_v2 }
  0x45   :  { %434 = vmatmul.f32.gmra.mxu1 %v644_v53 }
  0x47   :  { %251 = vmatmul.f32.gmra.mxu2 %v101_v10 }
  0x4a   :  { %385 = vmatmul.f32.gmra.mxu0 %v100_v6 }
  0x4c   :  { %316 = vmatmul.f32.gmra.mxu3 %v102_v14 }
  0x4d   :  { %438 = vmatmul.f32.gmra.mxu1 %v100_v6 }
  0x4f   :  { %256 = vmatmul.f32.gmra.mxu2 %v595_v23 }
  0x52   :  { %389 = vmatmul.f32.gmra.mxu0 %v581_v15 }
  0x54   :  { %322 = vmatmul.f32.gmra.mxu3 %v110_v30 }
  0x55   :  { %442 = vmatmul.f32.gmra.mxu1 %v581_v15 }
  0x57   :  { %261 = vmatmul.f32.gmra.mxu2 %v600_v27 }
  0x5a   :  { %393 = vmatmul.f32.gmra.mxu0 %v589_v19 }
  0x5c   :  { %328 = vmatmul.f32.gmra.mxu3 %v118_v41 }
  0x5d   :  { %446 = vmatmul.f32.gmra.mxu1 %v589_v19 }
  0x5f   :  { %266 = vmatmul.f32.gmra.mxu2 %v642_v52 }
  0x62   :  { %397 = vmatmul.f32.gmra.mxu0 %v613_v35 }
  0x64   :  { %334 = vmatmul.f32.gmra.mxu3 %v126_v61 }
  0x65   :  { %450 = vmatmul.f32.gmra.mxu1 %v613_v35 }
  0x67   :  { %271 = vmatmul.f32.gmra.mxu2 %v133_v8 }
  0x6a   :  { %401 = vmatmul.f32.gmra.mxu0 %v653_v62 }
  0x6c   :  { %340 = vmatmul.f32.gmra.mxu3 %v134_v12 }
  0x6d   :  { %454 = vmatmul.f32.gmra.mxu1 %v653_v62 }
  0x8f   :  { %v82_v9 = vpop.f32.mrf.mxu0 }
  0x90   :  { %v83_v34 = vadd.f32 %v717_v31, %v82_v9 }
  0x92   :  { %v114_v15 = vpop.f32.mrf.mxu2  ;;  %v179_v18 = vpop.f32.mrf.mxu1 }
  0x93   :  { %v180_v37 = vadd.f32 %v179_v18, %v83_v34  ;;  %v115_v3 = vadd.f32 %v717_v31, %v114_v15 }
  0x97   :  { %v195_v20 = vpop.f32.mrf.mxu3  ;;  %v90_v19 = vpop.f32.mrf.mxu0 }
  0x98   :  { %v91_v41 = vadd.f32 %v717_v31, %v90_v19  ;;  %v196_v4 = vadd.f32 %v195_v20, %v115_v3 }
  0x9a   :  { %v704_v21 = vpop.f32.mrf.mxu2  ;;  %v183_v22 = vpop.f32.mrf.mxu1 }
  0x9b   :  { %v184_v46 = vadd.f32 %v183_v22, %v91_v41  ;;  %v123_v9 = vadd.f32 %v717_v31, %v704_v21 }
  0x9f   :  { %v706_v23 = vpop.f32.mrf.mxu3  ;;  %v98_v24 = vpop.f32.mrf.mxu0 }
  0xa0   :  { %v99_v51 = vadd.f32 %v717_v31, %v98_v24 }
  0xa2   :  { %v708_v25 = vpop.f32.mrf.mxu2  ;;  %v187_v26 = vpop.f32.mrf.mxu1 }
  0xa3   :  { %v188_v56 = vadd.f32 %v187_v26, %v99_v51  ;;  %v200_v26 = vadd.f32 %v706_v23, %v123_v9  ;;  %v131_v20 = vadd.f32 %v717_v31, %v708_v25 }
  0xa7   :  { %v710_v27 = vpop.f32.mrf.mxu3  ;;  %v106_v28 = vpop.f32.mrf.mxu0 }
  0xa8   :  { %v107_v61 = vadd.f32 %v717_v31, %v106_v28 }
  0xaa   :  { %v712_v29 = vpop.f32.mrf.mxu2  ;;  %v191_v30 = vpop.f32.mrf.mxu1 }
  0xab   :  { %v192_v2 = vadd.f32 %v191_v30, %v107_v61  ;;  %v139_v23 = vadd.f32 %v717_v31, %v712_v29 }
  0xaf   :  { %v719_v32 = vpop.f32.mrf.mxu3  ;;  %v374_v33 = vpop.f32.mrf.mxu0 }
  0xb2   :  { %v237_v35 = vpop.f32.mrf.mxu2  ;;  %v427_v36 = vpop.f32.mrf.mxu1 }
  0xb3   :  { %v238_v38 = vadd.f32 %v237_v35, %v180_v37  ;;  %v204_v37 = vadd.f32 %v710_v27, %v131_v20 }
  0xb7   :  { %v299_v39 = vpop.f32.mrf.mxu3  ;;  %v378_v40 = vpop.f32.mrf.mxu0 }
  0xb8   :  { %v300_v42 = vadd.f32 %v299_v39, %v238_v38 }
  0xba   :  { %v242_v43 = vpop.f32.mrf.mxu2  ;;  %v375_v44 = vadd.f32 %v374_v33, %v300_v42  ;;  %v431_v45 = vpop.f32.mrf.mxu1 }
  0xbb   :  { %v243_v48 = vadd.f32 %v242_v43, %v184_v46 }
  0xbc   :  { %v428_v47 = vadd.f32 %v427_v36, %v375_v44 }
  0xbe   :  { %458 = vst [vmem:[#allocation2] sm:$0xff] %v428_v47 }
  0xbf   :  { %v305_v49 = vpop.f32.mrf.mxu3  ;;  %v382_v50 = vpop.f32.mrf.mxu0 }
  0xc0   :  { %v306_v52 = vadd.f32 %v305_v49, %v243_v48 }
  0xc2   :  { %v247_v53 = vpop.f32.mrf.mxu2  ;;  %v379_v54 = vadd.f32 %v378_v40, %v306_v52  ;;  %v435_v55 = vpop.f32.mrf.mxu1 }
  0xc3   :  { %v248_v58 = vadd.f32 %v247_v53, %v188_v56 }
  0xc4   :  { %v432_v57 = vadd.f32 %v431_v45, %v379_v54  ;;  %v208_v45 = vadd.f32 %v719_v32, %v139_v23 }
  0xc6   :  { %459 = vst [vmem:[#allocation2 + $0x8] sm:$0xff] %v432_v57 }
  0xc7   :  { %v311_v59 = vpop.f32.mrf.mxu3  ;;  %v386_v60 = vpop.f32.mrf.mxu0 }
  0xc8   :  { %v312_v62 = vadd.f32 %v311_v59, %v248_v58 }
  0xca   :  { %v252_v63 = vpop.f32.mrf.mxu2  ;;  %v383_v0 = vadd.f32 %v382_v50, %v312_v62  ;;  %v439_v1 = vpop.f32.mrf.mxu1 }
  0xcb   :  { %v253_v7 = vadd.f32 %v252_v63, %v192_v2 }
  0xcc   :  { %v436_v6 = vadd.f32 %v435_v55, %v383_v0 }
  0xce   :  { %460 = vst [vmem:[#allocation2 + $0x10] sm:$0xff] %v436_v6 }
  0xcf   :  { %v317_v8 = vpop.f32.mrf.mxu3  ;;  %v390_v11 = vpop.f32.mrf.mxu0 }
  0xd0   :  { %v318_v10 = vadd.f32 %v317_v8, %v253_v7 }
  0xd2   :  { %v257_v12 = vpop.f32.mrf.mxu2  ;;  %v387_v13 = vadd.f32 %v386_v60, %v318_v10  ;;  %v443_v14 = vpop.f32.mrf.mxu1 }
  0xd3   :  { %v258_v17 = vadd.f32 %v257_v12, %v196_v4 }
  0xd4   :  { %v440_v16 = vadd.f32 %v439_v1, %v387_v13 }
  0xd6   :  { %461 = vst [vmem:[#allocation2 + $0x18] sm:$0xff] %v440_v16 }
  0xd7   :  { %v323_v5 = vpop.f32.mrf.mxu3  ;;  %v394_v24 = vpop.f32.mrf.mxu0 }
  0xd8   :  { %v324_v18 = vadd.f32 %v323_v5, %v258_v17 }
  0xda   :  { %v262_v19 = vpop.f32.mrf.mxu2  ;;  %v391_v22 = vadd.f32 %v390_v11, %v324_v18  ;;  %v447_v28 = vpop.f32.mrf.mxu1 }
  0xdb   :  { %v263_v30 = vadd.f32 %v262_v19, %v200_v26 }
  0xdc   :  { %v444_v15 = vadd.f32 %v443_v14, %v391_v22 }
  0xde   :  { %462 = vst [vmem:[#allocation2 + $0x20] sm:$0xff] %v444_v15 }
  0xdf   :  { %v329_v33 = vpop.f32.mrf.mxu3  ;;  %v398_v38 = vpop.f32.mrf.mxu0 }
  0xe0   :  { %v330_v34 = vadd.f32 %v329_v33, %v263_v30 }
  0xe2   :  { %v267_v35 = vpop.f32.mrf.mxu2  ;;  %v395_v36 = vadd.f32 %v394_v24, %v330_v34  ;;  %v451_v41 = vpop.f32.mrf.mxu1 }
  0xe3   :  { %v268_v39 = vadd.f32 %v267_v35, %v204_v37 }
  0xe4   :  { %v448_v21 = vadd.f32 %v447_v28, %v395_v36 }
  0xe6   :  { %463 = vst [vmem:[#allocation2 + $0x28] sm:$0xff] %v448_v21 }
  0xe7   :  { %v335_v40 = vpop.f32.mrf.mxu3  ;;  %v402_v48 = vpop.f32.mrf.mxu0 }
  0xe8   :  { %v336_v42 = vadd.f32 %v335_v40, %v268_v39 }
  0xea   :  { %v399_v43 = vadd.f32 %v398_v38, %v336_v42  ;;  %v272_v44 = vpop.f32.mrf.mxu2  ;;  %v455_v49 = vpop.f32.mrf.mxu1 }
  0xeb   :  { %v273_v46 = vadd.f32 %v272_v44, %v208_v45 }
  0xec   :  { %v452_v25 = vadd.f32 %v451_v41, %v399_v43 }
  0xee   :  { %464 = vst [vmem:[#allocation2 + $0x30] sm:$0xff] %v452_v25 }
  0xef   :  { %v341_v47 = vpop.f32.mrf.mxu3 }
  0xf0   :  { %v342_v27 = vadd.f32 %v341_v47, %v273_v46 }
  0xf2   :  { %v403_v50 = vadd.f32 %v402_v48, %v342_v27 }
  0xf4   :  { %v456_v29 = vadd.f32 %v455_v49, %v403_v50 }
  0xf6   :  { %465 = vst [vmem:[#allocation2 + $0x38] sm:$0xff] %v456_v29 }
  0xf7   :  { %478 = dma.vmem_to_hbm [thread:$0]  %s471_s9, 1024, %s473_s12, [#allocation3], %s523_s13, %s523_s13, %s524_s14  }
  0xf8   :  { %520 = dma.done.wait [#allocation3], 1024  }
  0xf9   :  { %521 = vsyncadd [#allocation3], 4294966272 }
  0xfa   :  { %483 = vsyncpa [#allocation3], 1 }

</bundles_post_ra>
